<compile_context>
chip_gen: v5e
topology: v5e:2x2
jax: 0.10.0
libtpu: 0.0.40
codegen_flags: <defaults>
</compile_context>

<pallas_src>
import inspect

import jax
import jax.numpy as jnp
from jax.experimental import pallas as pl
from jax.experimental.pallas import tpu as pltpu


def _probe_pipeline_mode() -> bool:
    """One-time static probe: does this jax expose BlockSpec(pipeline_mode=pl.Buffered)?"""
    try:
        return hasattr(pl, "Buffered") and (
            "pipeline_mode" in inspect.signature(pl.BlockSpec).parameters
        )
    except (TypeError, ValueError):
        return False


_HAS_PIPELINE_MODE = _probe_pipeline_mode()


def learner_kernel(xt_ref, w1t_ref, b1_ref, w2t_ref, b2_ref, w3_ref, b3_ref, o_ref):
    """One lane-tile of the batch, batch-on-lanes layout.

    xt_ref : (D_in, tm)  input tile, batch on the lane axis
    w1t_ref: (H, D_in)   W1^T           b1_ref: (H, 1)
    w2t_ref: (H, H)      W2^T           b2_ref: (H, 1)
    w3_ref : (8, H)      fclayer weight row replicated to 8 sublanes (MXU-aligned M)
    b3_ref : (1,)        scalar fclayer bias in SMEM
    o_ref  : (1, tm)     lane-dense output row
    """
    # block_1: Linear + LeakyReLU(0.1). MXU dot (bf16 inputs, f32 accumulation).
    h1 = jnp.dot(w1t_ref[...], xt_ref[...], preferred_element_type=jnp.float32)
    h1 = h1 + b1_ref[...]
    h1 = jnp.maximum(h1, 0.1 * h1)          # LeakyReLU(0.1): mul+max, no select

    # block_2: Linear + LeakyReLU(0.1).
    h2 = jnp.dot(w2t_ref[...], h1.astype(w2t_ref.dtype),
                 preferred_element_type=jnp.float32)
    h2 = h2 + b2_ref[...]
    h2 = jnp.maximum(h2, 0.1 * h2)

    # fclayer: (8, H) @ (H, tm) -> (8, tm); keep row 0 -> lane-dense (1, tm) store.
    out8 = jnp.dot(w3_ref[...], h2.astype(w3_ref.dtype),
                   preferred_element_type=jnp.float32)
    o_ref[...] = (out8[0:1, :] + b3_ref[0]).astype(o_ref.dtype)


def _pick_lane_tile(B):
    """Batch (lane-axis) tile: always a multiple of 128 or the full batch (legal on Mosaic)."""
    if B < 256:
        return B                               # single grid step; lane dim == full array dim
    for tm in (4096, 2048, 1024, 512, 256, 128):
        if B % tm == 0 and B // tm >= 2:       # >=2 steps so v7x's 2 TensorCores both get work
            return tm
    return B                                   # irregular batch: one full-width step (no <128 tiles)


def _const_spec(shape):
    idx = lambda i: (0,) * len(shape)
    if _HAS_PIPELINE_MODE:
        # Constant index_map -> a single VMEM buffer suffices (no re-DMA, half the VMEM).
        return pl.BlockSpec(shape, idx, pipeline_mode=pl.Buffered(1))
    return pl.BlockSpec(shape, idx)


def prepare_learner_params(w1, b1, w2, b2, w3, b3, compute_dtype=jnp.bfloat16):
    """One-time weight preparation, hoisted out of the per-call path.

    Weights are given JAX-style as (in, out); biases as (out,) (or any shape with `out`
    elements). Returns a pytree of kernel-ready arrays (transposed, cast, replicated).
    """
    D_in, H = w1.shape
    cd = compute_dtype
    return {
        "w1t": jnp.asarray(w1.T, cd),                                  # (H, D_in)
        "b1": jnp.reshape(b1, (H, 1)).astype(jnp.float32),
        "w2t": jnp.asarray(w2.T, cd),                                  # (H, H)
        "b2": jnp.reshape(b2, (H, 1)).astype(jnp.float32),
        "w3row": jnp.tile(jnp.reshape(w3, (1, H)), (8, 1)).astype(cd),  # (8, H)
        "b3": jnp.reshape(b3, (1,)).astype(jnp.float32),               # scalar -> SMEM
    }


def _learner_forward_impl(params, x):
    B, D_in = x.shape
    w1t, b1 = params["w1t"], params["b1"]
    w2t, b2 = params["w2t"], params["b2"]
    w3row, b3 = params["w3row"], params["b3"]
    H = w1t.shape[0]
    cd = w1t.dtype
    itemsize = jnp.dtype(cd).itemsize

    tm = _pick_lane_tile(B)
    grid = (B // tm,)

    cost = pl.CostEstimate(
        flops=2 * B * (D_in * H + H * H + H),
        transcendentals=0,
        bytes_accessed=(B * D_in * itemsize + D_in * H * itemsize + H * H * itemsize
                        + 8 * H * itemsize + 2 * H * 4 + 4 + B * 4),
    )

    call = pl.pallas_call(
        learner_kernel,
        out_shape=jax.ShapeDtypeStruct((1, B), jnp.float32),       # batch on the lane axis
        grid_spec=pltpu.PrefetchScalarGridSpec(
            num_scalar_prefetch=0,
            grid=grid,
            in_specs=[
                pl.BlockSpec((D_in, tm), lambda i: (0, i)),        # x^T lane tile
                _const_spec((H, D_in)),                            # W1^T
                _const_spec((H, 1)),                               # b1 (column)
                _const_spec((H, H)),                               # W2^T (fully resident)
                _const_spec((H, 1)),                               # b2
                _const_spec((8, H)),                               # W3 row (replicated)
                pl.BlockSpec(memory_space=pltpu.MemorySpace.SMEM), # b3 scalar
            ],
            out_specs=pl.BlockSpec((1, tm), lambda i: (0, i)),     # lane-dense output row
        ),
        compiler_params=pltpu.CompilerParams(
            dimension_semantics=("parallel",),
        ),
        cost_estimate=cost,
    )

    # x -> (D_in, B) in compute dtype (fused transpose+cast under jit); batch stays on the
    # lane axis through all three layers.
    xt = jnp.transpose(x).astype(cd)
    out_row = call(xt, w1t, b1, w2t, b2, w3row, b3)
    return jnp.reshape(out_row, (B, 1))


# jit the wrapper so the x transpose/cast and output reshape fuse around the pallas_call.
learner_forward = jax.jit(_learner_forward_impl)


def reference_forward(x, w1, b1, w2, b2, w3, b3, compute_dtype=jnp.bfloat16):
    """Pure-JAX reference mirroring the kernel numerics (bf16 MXU inputs, f32 accumulation)."""
    cd = compute_dtype

    def lrelu(v):
        return jnp.maximum(v, 0.1 * v)

    h1 = lrelu(jnp.dot(x.astype(cd), w1.astype(cd), preferred_element_type=jnp.float32)
               + jnp.reshape(b1, (1, -1)).astype(jnp.float32))
    h2 = lrelu(jnp.dot(h1.astype(cd), w2.astype(cd), preferred_element_type=jnp.float32)
               + jnp.reshape(b2, (1, -1)).astype(jnp.float32))
    return (jnp.dot(h2.astype(cd), w3.astype(cd), preferred_element_type=jnp.float32)
            + jnp.reshape(b3, (1, 1)).astype(jnp.float32))


if __name__ == "__main__":
    # Shapes consistent with the module: args.input_dim=32, hid_dim=128.
    B, D_IN, HID = 64, 32, 128

    key = jax.random.PRNGKey(0)
    kx, kx2, k1, k2, k3, kb1, kb2, kb3 = jax.random.split(key, 8)

    # Deterministic PyTorch-like uniform init; weights stored as (in, out).
    def init_linear(kw, kb, fan_in, fan_out):
        bound = 1.0 / jnp.sqrt(jnp.float32(fan_in))
        w = jax.random.uniform(kw, (fan_in, fan_out), jnp.float32, -bound, bound)
        b = jax.random.uniform(kb, (fan_out,), jnp.float32, -bound, bound)
        return w, b

    w1, b1 = init_linear(k1, kb1, D_IN, HID)
    w2, b2 = init_linear(k2, kb2, HID, HID)
    w3, b3 = init_linear(k3, kb3, HID, 1)

    # One-time weight prep (hoisted out of the forward path).
    params = prepare_learner_params(w1, b1, w2, b2, w3, b3)

    # Small batch: single grid step, lane dim == full batch.
    x = jax.random.normal(kx, (B, D_IN), dtype=jnp.float32)
    out = jax.block_until_ready(learner_forward(params, x))
    ref = reference_forward(x, w1, b1, w2, b2, w3, b3)
    assert out.shape == (B, 1)
    assert jnp.allclose(out, ref, atol=1e-2, rtol=1e-2), "small-batch mismatch vs. reference"

    # Larger batch: exercises the tiled, 2-step 'parallel' path (tm = 256).
    B2 = 512
    x2 = jax.random.normal(kx2, (B2, D_IN), dtype=jnp.float32)
    out2 = jax.block_until_ready(learner_forward(params, x2))
    ref2 = reference_forward(x2, w1, b1, w2, b2, w3, b3)
    assert out2.shape == (B2, 1)
    assert jnp.allclose(out2, ref2, atol=1e-2, rtol=1e-2), "tiled-batch mismatch vs. reference"

    print("KERNEL_OK")
</pallas_src>

<mosaic_0001>
module attributes {stable_mosaic.version = 11 : i64} {
  func.func @learner_kernel(%arg0: i32, %arg1: memref<32x64xbf16, #tpu.memory_space<vmem>>, %arg2: memref<128x32xbf16, #tpu.memory_space<vmem>>, %arg3: memref<128x1xf32, #tpu.memory_space<vmem>>, %arg4: memref<128x128xbf16, #tpu.memory_space<vmem>>, %arg5: memref<128x1xf32, #tpu.memory_space<vmem>>, %arg6: memref<8x128xbf16, #tpu.memory_space<vmem>>, %arg7: memref<1xf32, #tpu.memory_space<smem>>, %arg8: memref<1x64xf32, #tpu.memory_space<vmem>>) attributes {dimension_semantics = [#tpu.dimension_semantics<parallel>], iteration_bounds = array<i64: 1>, scalar_prefetch = 0 : i64, scratch_operands = 0 : i64, tpu.core_type = #tpu.core_type<tc>, window_params = [{transform_indices = @transform_0, window_bounds = array<i64: 32, 64>}, {pipeline_mode = #tpu.pipeline_mode<synchronous>, transform_indices = @transform_1, window_bounds = array<i64: 128, 32>}, {pipeline_mode = #tpu.pipeline_mode<synchronous>, transform_indices = @transform_2, window_bounds = array<i64: 128, 1>}, {pipeline_mode = #tpu.pipeline_mode<synchronous>, transform_indices = @transform_3, window_bounds = array<i64: 128, 128>}, {pipeline_mode = #tpu.pipeline_mode<synchronous>, transform_indices = @transform_4, window_bounds = array<i64: 128, 1>}, {pipeline_mode = #tpu.pipeline_mode<synchronous>, transform_indices = @transform_5, window_bounds = array<i64: 8, 128>}, {transform_indices = @transform_6, window_bounds = array<i64: 1>}, {transform_indices = @transform_7, window_bounds = array<i64: 1, 64>}]} {
    %c0 = arith.constant 0 : index
    %c0_0 = arith.constant 0 : index
    %0 = vector.load %arg2[%c0, %c0_0] : memref<128x32xbf16, #tpu.memory_space<vmem>>, vector<128x32xbf16>
    %c0_1 = arith.constant 0 : index
    %c0_2 = arith.constant 0 : index
    %1 = vector.load %arg1[%c0_1, %c0_2] : memref<32x64xbf16, #tpu.memory_space<vmem>>, vector<32x64xbf16>
    %cst = arith.constant dense<0.000000e+00> : vector<128x64xf32>
    %2 = tpu.matmul %0, %1, %cst {dimension_numbers = #tpu.dot_dimension_numbers<[1], [0], [0], [1], [0, 0, 1, 1], [], []>} : vector<128x32xbf16>, vector<32x64xbf16>, vector<128x64xf32> -> vector<128x64xf32>
    %c0_3 = arith.constant 0 : index
    %c0_4 = arith.constant 0 : index
    %3 = vector.load %arg3[%c0_3, %c0_4] : memref<128x1xf32, #tpu.memory_space<vmem>>, vector<128x1xf32>
    %4 = vector.broadcast %3 : vector<128x1xf32> to vector<128x64xf32>
    %5 = arith.addf %2, %4 : vector<128x64xf32>
    %cst_5 = arith.constant 1.000000e-01 : f32
    %6 = vector.broadcast %cst_5 : f32 to vector<128x64xf32>
    %7 = arith.mulf %6, %5 : vector<128x64xf32>
    %8 = arith.maximumf %5, %7 : vector<128x64xf32>
    %c0_6 = arith.constant 0 : index
    %c0_7 = arith.constant 0 : index
    %9 = vector.load %arg4[%c0_6, %c0_7] : memref<128x128xbf16, #tpu.memory_space<vmem>>, vector<128x128xbf16>
    %10 = arith.truncf %8 : vector<128x64xf32> to vector<128x64xbf16>
    %cst_8 = arith.constant dense<0.000000e+00> : vector<128x64xf32>
    %11 = tpu.matmul %9, %10, %cst_8 {dimension_numbers = #tpu.dot_dimension_numbers<[1], [0], [0], [1], [0, 0, 1, 1], [], []>} : vector<128x128xbf16>, vector<128x64xbf16>, vector<128x64xf32> -> vector<128x64xf32>
    %c0_9 = arith.constant 0 : index
    %c0_10 = arith.constant 0 : index
    %12 = vector.load %arg5[%c0_9, %c0_10] : memref<128x1xf32, #tpu.memory_space<vmem>>, vector<128x1xf32>
    %13 = vector.broadcast %12 : vector<128x1xf32> to vector<128x64xf32>
    %14 = arith.addf %11, %13 : vector<128x64xf32>
    %cst_11 = arith.constant 1.000000e-01 : f32
    %15 = vector.broadcast %cst_11 : f32 to vector<128x64xf32>
    %16 = arith.mulf %15, %14 : vector<128x64xf32>
    %17 = arith.maximumf %14, %16 : vector<128x64xf32>
    %c0_12 = arith.constant 0 : index
    %c0_13 = arith.constant 0 : index
    %18 = vector.load %arg6[%c0_12, %c0_13] : memref<8x128xbf16, #tpu.memory_space<vmem>>, vector<8x128xbf16>
    %19 = arith.truncf %17 : vector<128x64xf32> to vector<128x64xbf16>
    %cst_14 = arith.constant dense<0.000000e+00> : vector<8x64xf32>
    %20 = tpu.matmul %18, %19, %cst_14 {dimension_numbers = #tpu.dot_dimension_numbers<[1], [0], [0], [1], [0, 0, 1, 1], [], []>} : vector<8x128xbf16>, vector<128x64xbf16>, vector<8x64xf32> -> vector<8x64xf32>
    %21 = vector.extract_strided_slice %20 {offsets = [0, 0], sizes = [1, 64], strides = [1, 1]} : vector<8x64xf32> to vector<1x64xf32>
    %c0_15 = arith.constant 0 : index
    %22 = memref.load %arg7[%c0_15] : memref<1xf32, #tpu.memory_space<smem>>
    %23 = vector.broadcast %22 : f32 to vector<1x64xf32>
    %24 = arith.addf %21, %23 : vector<1x64xf32>
    %c0_16 = arith.constant 0 : index
    %c0_17 = arith.constant 0 : index
    %25 = vector.load %arg8[%c0_16, %c0_17] : memref<1x64xf32, #tpu.memory_space<vmem>>, vector<1x64xf32>
    tpu.vector_store %arg8[%c0_16, %c0_17], %24 {strides = array<i32>} : memref<1x64xf32, #tpu.memory_space<vmem>>, vector<1x64xf32>,
    return
  }
  func.func @transform_0(%arg0: i32) -> (i32, i32) {
    %c0_i32 = arith.constant 0 : i32
    %c0_i32_0 = arith.constant 0 : i32
    return %c0_i32, %arg0 : i32, i32
  }
  func.func @transform_1(%arg0: i32) -> (i32, i32) {
    %c0_i32 = arith.constant 0 : i32
    %c0_i32_0 = arith.constant 0 : i32
    %c0_i32_1 = arith.constant 0 : i32
    return %c0_i32, %c0_i32_0 : i32, i32
  }
  func.func @transform_2(%arg0: i32) -> (i32, i32) {
    %c0_i32 = arith.constant 0 : i32
    %c0_i32_0 = arith.constant 0 : i32
    %c0_i32_1 = arith.constant 0 : i32
    return %c0_i32, %c0_i32_0 : i32, i32
  }
  func.func @transform_3(%arg0: i32) -> (i32, i32) {
    %c0_i32 = arith.constant 0 : i32
    %c0_i32_0 = arith.constant 0 : i32
    %c0_i32_1 = arith.constant 0 : i32
    return %c0_i32, %c0_i32_0 : i32, i32
  }
  func.func @transform_4(%arg0: i32) -> (i32, i32) {
    %c0_i32 = arith.constant 0 : i32
    %c0_i32_0 = arith.constant 0 : i32
    %c0_i32_1 = arith.constant 0 : i32
    return %c0_i32, %c0_i32_0 : i32, i32
  }
  func.func @transform_5(%arg0: i32) -> (i32, i32) {
    %c0_i32 = arith.constant 0 : i32
    %c0_i32_0 = arith.constant 0 : i32
    %c0_i32_1 = arith.constant 0 : i32
    return %c0_i32, %c0_i32_0 : i32, i32
  }
  func.func @transform_6(%arg0: i32) -> i32 {
    %c0_i32 = arith.constant 0 : i32
    %c0_i32_0 = arith.constant 0 : i32
    return %c0_i32 : i32
  }
  func.func @transform_7(%arg0: i32) -> (i32, i32) {
    %c0_i32 = arith.constant 0 : i32
    %c0_i32_0 = arith.constant 0 : i32
    return %c0_i32, %arg0 : i32, i32
  }
}

</mosaic_0001>

<bundles_post_ra>
// kernel: _learner_forward_impl.1
= control target key start
LH: loop header
LB: loop body
LE: loop exit
PB: predicated region body
PF: predicated region fallthrough
CT: control target
= control target key end

     0   :  { %v734_v3 = vmov 0   ;;  %s968_s0 = inlined_call_operand.vmem [shape: bf16[32,64], index: 0, kind: input, shape index: {}]   ;;  %s969_s1 = inlined_call_operand.vmem [shape: bf16[128,32], index: 1, kind: input, shape index: {}]   ;;  %s970_s2 = inlined_call_operand.vmem [shape: f32[128,1], index: 2, kind: input, shape index: {}]   ;;  %s971_s3 = inlined_call_operand.vmem [shape: bf16[128,128], index: 3, kind: input, shape index: {}]   ;;  %s972_s4 = inlined_call_operand.vmem [shape: f32[128,1], index: 4, kind: input, shape index: {}]   ;;  %s973_s5 = inlined_call_operand.vmem [shape: bf16[8,128], index: 5, kind: input, shape index: {}]   ;;  %s974_s6 = inlined_call_operand.<no memory space> [shape: f32[1], index: 6, kind: input, shape index: {}]   ;;  %s975_s7 = inlined_call_operand.hbm [shape: f32[1,64], index: 7, kind: output, shape index: {}]  }
   0x1   :  { %v63_v0 = vld [vmem:[%s970_s2 + $0x70] sm:$0xff]  ;;  %v61_v1 = vld [vmem:[%s970_s2 + $0x60] sm:$0xff]  ;;  %v684_v2 = vld [vmem:[%s968_s0 + $0x8] sm:$0xff]  ;;  %706 = vset.pattern.permute.xlu1 %v734_v3  ;;  %705 = vset.pattern.permute.xlu0 %v734_v3 }
   0x2   :  { %137 = vperm.xlu0 %705, %v63_v0   ;;  %127 = vperm.xlu1 %706, %v61_v1   ;;  %v59_v4 = vld [vmem:[%s970_s2 + $0x50] sm:$0xff]  ;;  %v683_v5 = vld [vmem:[%s968_s0] sm:$0xff]  ;;  %v64_v6 = vld [vmem:[%s970_s2 + $0x78] sm:$0xff] }
   0x3   :  { %228 = vmatpush.bf16.msra.mxu0 %v684_v2  ;;  %693 = vmatpush.bf16.msra.mxu2 %v684_v2  ;;  %v62_v7 = vld [vmem:[%s970_s2 + $0x68] sm:$0xff]  ;;  %v675_v8 = vld [vmem:[%s969_s1] sm:$0xff] }
   0x4   :  { %707 = vset.pattern.permute.xlu2 %v734_v3  ;;  %v680_v9 = vld [vmem:[%s969_s1 + $0x28] sm:$0xff] }
   0x5   :  { %117 = vperm.xlu2 %707, %v59_v4  }
   0x7   :  { %229 = vmatpush.bf16.msra.mxu0 %v683_v5  ;;  %694 = vmatpush.bf16.msra.mxu2 %v683_v5 }
   0x8   :  { %13 = vsyncpa [#allocation4], 0  ;;  %vm197_vm0 = vcmask 261120   ;;  %v60_v10 = vld [vmem:[%s970_s2 + $0x58] sm:$0xff]  ;;  %v58_v11 = vld [vmem:[%s970_s2 + $0x48] sm:$0xff]  ;;  %s735_s27 = smov [#allocation3]  }
   0x9   :  { %v57_v12 = vld [vmem:[%s970_s2 + $0x40] sm:$0xff]  ;;  %v55_v13 = vld [vmem:[%s970_s2 + $0x30] sm:$0xff]  ;;  %v56_v14 = vld [vmem:[%s970_s2 + $0x38] sm:$0xff]  ;;  %s586_s30 = sshll.u32 %s975_s7, 4  ;;  %vm577_vm1 = vcmask 516096   ;;  %s587_s30 = int_to_ptr.hbm [resolvable:$true] %s586_s30 }
   0xa   :  { %142 = vperm.xlu0 %705, %v64_v6   ;;  %132 = vperm.xlu1 %706, %v62_v7   ;;  %v53_v15 = vld [vmem:[%s970_s2 + $0x20] sm:$0xff]  ;;  %v676_v16 = vld [vmem:[%s969_s1 + $0x8] sm:$0xff]  ;;  %v681_v17 = vld [vmem:[%s969_s1 + $0x30] sm:$0xff] }
   0xb   :  { %635 = vmatmul.msk.bf16.vlgmr.msra.gmra.mxu0 %vm197_vm0, %v675_v8  ;;  %640 = vmatmul.msk.bf16.vlgmr.msra.gmra.mxu2 %vm197_vm0, %v680_v9  ;;  %v54_v18 = vld [vmem:[%s970_s2 + $0x28] sm:$0xff]  ;;  %v52_v19 = vld [vmem:[%s970_s2 + $0x18] sm:$0xff]  ;;  %v51_v20 = vld [vmem:[%s970_s2 + $0x10] sm:$0xff] }
   0xc   :  { %v49_v21 = vld [vmem:[%s970_s2] sm:$0xff]  ;;  %v341_v22 = vld [vmem:[%s972_s4 + $0x70] sm:$0xff]  ;;  %v50_v23 = vld [vmem:[%s970_s2 + $0x8] sm:$0xff]  ;;  %s584_s2 = sshll.u32 %s735_s27, 4  ;;  %s585_s2 = int_to_ptr.vmem [resolvable:$true] %s584_s2 }
   0xd   :  { %122 = vperm.xlu2 %707, %v60_v10   ;;  %v677_v24 = vld [vmem:[%s969_s1 + $0x10] sm:$0xff]  ;;  %v682_v25 = vld [vmem:[%s969_s1 + $0x38] sm:$0xff]  ;;  %v340_v27 = vld [vmem:[%s972_s4 + $0x68] sm:$0xff] }
   0xe   :  { %v342_v26 = vld [vmem:[%s972_s4 + $0x78] sm:$0xff]  ;;  %v339_v28 = vld [vmem:[%s972_s4 + $0x60] sm:$0xff]  ;;  %v337_v29 = vld [vmem:[%s972_s4 + $0x50] sm:$0xff] }
   0xf   :  { %v335_v30 = vld [vmem:[%s972_s4 + $0x40] sm:$0xff]  ;;  %v338_v31 = vld [vmem:[%s972_s4 + $0x58] sm:$0xff]  ;;  %v336_v33 = vld [vmem:[%s972_s4 + $0x48] sm:$0xff] }
  0x10   :  { %v678_v32 = vld [vmem:[%s969_s1 + $0x18] sm:$0xff]  ;;  %v333_v35 = vld [vmem:[%s972_s4 + $0x30] sm:$0xff]  ;;  %v331_v36 = vld [vmem:[%s972_s4 + $0x20] sm:$0xff] }
  0x11   :  { %v334_v34 = vld [vmem:[%s972_s4 + $0x38] sm:$0xff]  ;;  %v329_v37 = vld [vmem:[%s972_s4 + $0x10] sm:$0xff]  ;;  %v332_v38 = vld [vmem:[%s972_s4 + $0x28] sm:$0xff] }
  0x12   :  { %112 = vperm.xlu1 %706, %v58_v11   ;;  %107 = vperm.xlu0 %705, %v57_v12   ;;  %v679_v39 = vld [vmem:[%s969_s1 + $0x20] sm:$0xff]  ;;  %v330_v40 = vld [vmem:[%s972_s4 + $0x18] sm:$0xff]  ;;  %v328_v41 = vld [vmem:[%s972_s4 + $0x8] sm:$0xff] }
  0x13   :  { %v327_v42 = vld [vmem:[%s972_s4] sm:$0xff] }
  0x15   :  { %97 = vperm.xlu2 %707, %v55_v13  }
  0x1a   :  { %102 = vperm.xlu0 %705, %v56_v14   ;;  %87 = vperm.xlu1 %706, %v53_v15  }
  0x1b   :  { %636 = vmatmul.msk.bf16.gmra.mxu0 %vm197_vm0, %v676_v16  ;;  %641 = vmatmul.msk.bf16.gmra.mxu2 %vm197_vm0, %v681_v17 }
  0x1d   :  { %92 = vperm.xlu2 %707, %v54_v18  }
  0x22   :  { %82 = vperm.xlu1 %706, %v52_v19   ;;  %77 = vperm.xlu0 %705, %v51_v20  }
  0x25   :  { %67 = vperm.xlu2 %707, %v49_v21  }
  0x2a   :  { %415 = vperm.xlu1 %706, %v341_v22   ;;  %72 = vperm.xlu0 %705, %v50_v23  }
  0x2b   :  { %637 = vmatmul.msk.bf16.gmra.mxu0 %vm197_vm0, %v677_v24  ;;  %642 = vmatmul.msk.bf16.gmra.mxu2 %vm197_vm0, %v682_v25 }
  0x2d   :  { %420 = vperm.xlu2 %707, %v342_v26  }
  0x32   :  { %410 = vperm.xlu1 %706, %v340_v27   ;;  %405 = vperm.xlu0 %705, %v339_v28  }
  0x35   :  { %395 = vperm.xlu2 %707, %v337_v29  }
  0x3a   :  { %385 = vperm.xlu1 %706, %v335_v30   ;;  %400 = vperm.xlu0 %705, %v338_v31  }
  0x3b   :  { %638 = vmatmul.msk.bf16.gmra.mxu0 %vm197_vm0, %v678_v32 }
  0x3d   :  { %390 = vperm.xlu2 %707, %v336_v33  }
  0x42   :  { %380 = vperm.xlu1 %706, %v334_v34   ;;  %375 = vperm.xlu0 %705, %v333_v35  }
  0x45   :  { %365 = vperm.xlu2 %707, %v331_v36  }
  0x4a   :  { %355 = vperm.xlu1 %706, %v329_v37   ;;  %370 = vperm.xlu0 %705, %v332_v38  }
  0x4b   :  { %639 = vmatmul.msk.bf16.gmra.mxu0 %vm197_vm0, %v679_v39 }
  0x4d   :  { %360 = vperm.xlu2 %707, %v330_v40  }
  0x52   :  { %350 = vperm.xlu1 %706, %v328_v41   ;;  %345 = vperm.xlu0 %705, %v327_v42  }
  0x5f   :  { %v118_v43 = vpop.permute.xlu2 %117 }
  0x67   :  { %v123_v45 = vpop.permute.xlu2 %122 }
  0x6f   :  { %v910_v47 = vpop.permute.xlu2 %97 }
  0x74   :  { %v138_v44 = vpop.permute.xlu0 %137  ;;  %v128_v6 = vpop.permute.xlu1 %127 }
  0x77   :  { %v912_v50 = vpop.permute.xlu2 %92 }
  0x7c   :  { %v143_v46 = vpop.permute.xlu0 %142  ;;  %v133_v10 = vpop.permute.xlu1 %132 }
  0x7f   :  { %v68_v55 = vpop.permute.xlu2 %67 }
  0x84   :  { %v108_v48 = vpop.permute.xlu0 %107  ;;  %v113_v33 = vpop.permute.xlu1 %112 }
  0x88   :  { %v231_v49 = vpop.f32.mrf.mxu0 }
  0x89   :  { %v232_v58 = vadd.f32 %v231_v49, %v68_v55 }
  0x8b   :  { %v271_v60 = vmul.f32 0.1, %v232_v58 }
  0x8c   :  { %v103_v51 = vpop.permute.xlu0 %102  ;;  %v88_v36 = vpop.permute.xlu1 %87 }
  0x8d   :  { %v287_v1 = vmax.f32 %v232_v58, %v271_v60 }
  0x8e   :  { %v256_v52 = vpop.f32.mrf.mxu2 }
  0x8f   :  { %v257_v16 = vadd.f32 %v256_v52, %v118_v43 }
  0x90   :  { %v233_v53 = vpop.f32.mrf.mxu0 }
  0x91   :  { %v281_v24 = vmul.f32 0.1, %v257_v16 }
  0x93   :  { %v297_v30 = vmax.f32 %v257_v16, %v281_v24 }
  0x94   :  { %v914_v54 = vpop.permute.xlu0 %77  ;;  %v83_v55 = vpop.permute.xlu1 %82 }
  0x96   :  { %v258_v56 = vpop.f32.mrf.mxu2 }
  0x97   :  { %v259_v17 = vadd.f32 %v258_v56, %v123_v45 }
  0x98   :  { %v916_v57 = vpop.f32.mrf.mxu0 }
  0x99   :  { %v282_v25 = vmul.f32 0.1, %v259_v17 }
  0x9b   :  { %v298_v31 = vmax.f32 %v259_v17, %v282_v25 }
  0x9c   :  { %v73_v59 = vpop.permute.xlu0 %72 }
  0x9d   :  { %v234_v61 = vadd.f32 %v233_v53, %v73_v59  ;;  %v324_v34 = vpack.c.bf16 %v298_v31, %v297_v30 }
  0x9e   :  { %v261_v62 = vpop.f32.mrf.mxu2 }
  0x9f   :  { %v272_v63 = vmul.f32 0.1, %v234_v61  ;;  %v262_v11 = vadd.f32 %v261_v62, %v128_v6  ;;  %v686_v6 = vld [vmem:[%s971_s3 + $0x8] sm:$0xff] }
  0xa0   :  { %v238_v0 = vpop.f32.mrf.mxu0 }
  0xa1   :  { %v288_v2 = vmax.f32 %v234_v61, %v272_v63  ;;  %v283_v19 = vmul.f32 0.1, %v262_v11  ;;  %v239_v56 = vadd.f32 %v238_v0, %v83_v55 }
  0xa3   :  { %v918_v3 = vpack.c.bf16 %v288_v2, %v287_v1  ;;  %v299_v26 = vmax.f32 %v262_v11, %v283_v19  ;;  %v274_v61 = vmul.f32 0.1, %v239_v56  ;;  %v416_v19 = vpop.permute.xlu1 %415 }
  0xa4   :  { %v406_v24 = vpop.permute.xlu0 %405 }
  0xa5   :  { %v290_v2 = vmax.f32 %v239_v56, %v274_v61 }
  0xa6   :  { %v263_v4 = vpop.f32.mrf.mxu2 }
  0xa7   :  { %v264_v12 = vadd.f32 %v263_v4, %v133_v10  ;;  %v692_v10 = vld [vmem:[%s971_s3 + $0x38] sm:$0xff] }
  0xa8   :  { %v241_v5 = vpop.f32.mrf.mxu0 }
  0xa9   :  { %v284_v20 = vmul.f32 0.1, %v264_v12 }
  0xab   :  { %v300_v27 = vmax.f32 %v264_v12, %v284_v20 }
  0xac   :  { %v401_v30 = vpop.permute.xlu0 %400 }
  0xad   :  { %v325_v32 = vpack.c.bf16 %v300_v27, %v299_v26 }
  0xae   :  { %v266_v7 = vpop.f32.mrf.mxu2 }
  0xaf   :  { %v267_v9 = vadd.f32 %v266_v7, %v138_v44  ;;  %v690_v7 = vld [vmem:[%s971_s3 + $0x28] sm:$0xff] }
  0xb0   :  { %v243_v8 = vpop.f32.mrf.mxu0 }
  0xb1   :  { %v285_v13 = vmul.f32 0.1, %v267_v9  ;;  %v244_v43 = vadd.f32 %v243_v8, %v912_v50  ;;  %v687_v8 = vld [vmem:[%s971_s3 + $0x10] sm:$0xff] }
  0xb3   :  { %v301_v21 = vmax.f32 %v267_v9, %v285_v13  ;;  %v276_v58 = vmul.f32 0.1, %v244_v43  ;;  %v688_v9 = vld [vmem:[%s971_s3 + $0x18] sm:$0xff] }
  0xb5   :  { %v292_v50 = vmax.f32 %v244_v43, %v276_v58  ;;  %v376_v43 = vpop.permute.xlu0 %375 }
  0xb6   :  { %v268_v14 = vpop.f32.mrf.mxu2 }
  0xb7   :  { %v269_v15 = vadd.f32 %v268_v14, %v143_v46  ;;  %v242_v46 = vadd.f32 %v241_v5, %v88_v36 }
  0xb8   :  { %v246_v18 = vpop.f32.mrf.mxu0 }
  0xb9   :  { %v286_v22 = vmul.f32 0.1, %v269_v15  ;;  %v247_v40 = vadd.f32 %v246_v18, %v910_v47 }
  0xbb   :  { %v302_v23 = vmax.f32 %v269_v15, %v286_v22  ;;  %v277_v49 = vmul.f32 0.1, %v247_v40 }
  0xbd   :  { %v326_v28 = vpack.c.bf16 %v302_v23, %v301_v21  ;;  %v293_v47 = vmax.f32 %v247_v40, %v277_v49  ;;  %v421_v21 = vpop.permute.xlu2 %420  ;;  %v411_v23 = vpop.permute.xlu1 %410 }
  0xbf   :  { %471 = vmatpush.bf16.msra.mxu1 %v326_v28  ;;  %695 = vmatpush.bf16.msra.mxu3 %v326_v28 }
  0xc0   :  { %v248_v29 = vpop.f32.mrf.mxu0 }
  0xc1   :  { %v249_v38 = vadd.f32 %v248_v29, %v103_v51  ;;  %v275_v51 = vmul.f32 0.1, %v242_v46 }
  0xc3   :  { %472 = vmatpush.bf16.msra.mxu1 %v325_v32  ;;  %696 = vmatpush.bf16.msra.mxu3 %v325_v32  ;;  %v278_v44 = vmul.f32 0.1, %v249_v38  ;;  %v291_v1 = vmax.f32 %v242_v46, %v275_v51 }
  0xc5   :  { %v294_v59 = vmax.f32 %v249_v38, %v278_v44  ;;  %v321_v4 = vpack.c.bf16 %v292_v50, %v291_v1  ;;  %v396_v26 = vpop.permute.xlu2 %395  ;;  %v386_v28 = vpop.permute.xlu1 %385 }
  0xc7   :  { %473 = vmatpush.bf16.msra.mxu1 %v324_v34  ;;  %697 = vmatpush.bf16.msra.mxu3 %v324_v34  ;;  %v322_v62 = vpack.c.bf16 %v294_v59, %v293_v47 }
  0xc8   :  { %v251_v35 = vpop.f32.mrf.mxu0 }
  0xc9   :  { %v252_v37 = vadd.f32 %v251_v35, %v108_v48  ;;  %v237_v48 = vadd.f32 %v916_v57, %v914_v54  ;;  %v685_v54 = vld [vmem:[%s971_s3] sm:$0xff] }
  0xca   :  { %v689_v57 = vld [vmem:[%s971_s3 + $0x20] sm:$0xff] }
  0xcb   :  { %v279_v41 = vmul.f32 0.1, %v252_v37  ;;  %v273_v63 = vmul.f32 0.1, %v237_v48 }
  0xcd   :  { %v295_v52 = vmax.f32 %v252_v37, %v279_v41  ;;  %v289_v0 = vmax.f32 %v237_v48, %v273_v63  ;;  %v391_v32 = vpop.permute.xlu2 %390 }
  0xcf   :  { %v320_v5 = vpack.c.bf16 %v290_v2, %v289_v0  ;;  %v371_v0 = vpop.permute.xlu0 %370 }
  0xd0   :  { %v253_v39 = vpop.f32.mrf.mxu0 }
  0xd1   :  { %v254_v42 = vadd.f32 %v253_v39, %v113_v33  ;;  %v381_v39 = vpop.permute.xlu1 %380 }
  0xd3   :  { %v280_v45 = vmul.f32 0.1, %v254_v42 }
  0xd5   :  { %v296_v53 = vmax.f32 %v254_v42, %v280_v45  ;;  %v366_v58 = vpop.permute.xlu2 %365 }
  0xd7   :  { %v323_v60 = vpack.c.bf16 %v296_v53, %v295_v52 }
  0xd9   :  { %474 = vmatpush.bf16.msra.mxu1 %v323_v60  ;;  %698 = vmatpush.bf16.msra.mxu3 %v323_v60  ;;  %v356_v63 = vpop.permute.xlu1 %355 }
  0xdd   :  { %475 = vmatpush.bf16.msra.mxu1 %v322_v62  ;;  %699 = vmatpush.bf16.msra.mxu3 %v322_v62 }
  0xe1   :  { %476 = vmatpush.bf16.msra.mxu1 %v321_v4  ;;  %700 = vmatpush.bf16.msra.mxu3 %v321_v4 }
  0xe5   :  { %477 = vmatpush.bf16.msra.mxu1 %v320_v5  ;;  %701 = vmatpush.bf16.msra.mxu3 %v320_v5 }
  0xe9   :  { %478 = vmatpush.bf16.msra.mxu1 %v918_v3  ;;  %702 = vmatpush.bf16.msra.mxu3 %v918_v3  ;;  %v691_v3 = vld [vmem:[%s971_s3 + $0x30] sm:$0xff] }
  0xec   :  { %479 = vmatmul.bf16.vlgmr.msra.gmra.mxu1 %v685_v54  ;;  %499 = vmatmul.bf16.vlgmr.msra.gmra.mxu3 %v689_v57 }
  0xfc   :  { %484 = vmatmul.bf16.gmra.mxu1 %v686_v6  ;;  %504 = vmatmul.bf16.gmra.mxu3 %v690_v7 }
 0x10c   :  { %489 = vmatmul.bf16.gmra.mxu1 %v687_v8  ;;  %509 = vmatmul.bf16.gmra.mxu3 %v691_v3 }
 0x11c   :  { %494 = vmatmul.bf16.gmra.mxu1 %v688_v9  ;;  %514 = vmatmul.bf16.gmra.mxu3 %v692_v10  ;;  %v361_v9 = vpop.permute.xlu2 %360 }
 0x169   :  { %v950_v11 = vpop.f32.mrf.mxu1 }
 0x16f   :  { %v500_v12 = vpop.f32.mrf.mxu3 }
 0x170   :  { %v501_v60 = vadd.f32 %v500_v12, %v386_v28 }
 0x171   :  { %v952_v13 = vpop.f32.mrf.mxu1 }
 0x172   :  { %v528_v1 = vmul.f32 0.1, %v501_v60 }
 0x174   :  { %v544_v7 = vmax.f32 %v501_v60, %v528_v1 }
 0x177   :  { %v502_v14 = vpop.f32.mrf.mxu3 }
 0x178   :  { %v503_v52 = vadd.f32 %v502_v14, %v391_v32 }
 0x179   :  { %v954_v15 = vpop.f32.mrf.mxu1 }
 0x17a   :  { %v529_v47 = vmul.f32 0.1, %v503_v52 }
 0x17c   :  { %v545_v5 = vmax.f32 %v503_v52, %v529_v47 }
 0x17f   :  { %v505_v16 = vpop.f32.mrf.mxu3 }
 0x180   :  { %v506_v44 = vadd.f32 %v505_v16, %v396_v26  ;;  %v557_v16 = vpack.c.bf16 %v545_v5, %v544_v7 }
 0x181   :  { %v487_v17 = vpop.f32.mrf.mxu1 }
 0x182   :  { %v530_v48 = vmul.f32 0.1, %v506_v44  ;;  %v488_v10 = vadd.f32 %v487_v17, %v361_v9 }
 0x184   :  { %v546_v2 = vmax.f32 %v506_v44, %v530_v48 }
 0x187   :  { %v507_v18 = vpop.f32.mrf.mxu3 }
 0x188   :  { %v508_v40 = vadd.f32 %v507_v18, %v401_v30  ;;  %v486_v18 = vadd.f32 %v954_v15, %v356_v63 }
 0x189   :  { %v490_v22 = vpop.f32.mrf.mxu1 }
 0x18a   :  { %v531_v53 = vmul.f32 0.1, %v508_v40  ;;  %v491_v8 = vadd.f32 %v490_v22, %v366_v58  ;;  %v522_v28 = vmul.f32 0.1, %v486_v18 }
 0x18c   :  { %v547_v61 = vmax.f32 %v508_v40, %v531_v53  ;;  %v538_v15 = vmax.f32 %v486_v18, %v522_v28 }
 0x18e   :  { %v558_v6 = vpack.c.bf16 %v547_v61, %v546_v2 }
 0x18f   :  { %v510_v20 = vpop.f32.mrf.mxu3 }
 0x190   :  { %v511_v36 = vadd.f32 %v510_v20, %v406_v24  ;;  %v523_v24 = vmul.f32 0.1, %v488_v10 }
 0x191   :  { %v492_v27 = vpop.f32.mrf.mxu1 }
 0x192   :  { %v532_v45 = vmul.f32 0.1, %v511_v36  ;;  %v493_v54 = vadd.f32 %v492_v27, %v371_v0  ;;  %v346_v27 = vpop.permute.xlu0 %345  ;;  %v539_v30 = vmax.f32 %v488_v10, %v523_v24 }
 0x193   :  { %v481_v22 = vadd.f32 %v950_v11, %v346_v27  ;;  %v575_v11 = vstv %s974_s6 }
 0x194   :  { %v548_v51 = vmax.f32 %v511_v36, %v532_v45  ;;  %v525_v12 = vmul.f32 0.1, %v493_v54  ;;  %v552_v36 = vld [vmem:[%s973_s5] sm:$0xf] }
 0x195   :  { %v520_v32 = vmul.f32 0.1, %v481_v22 }
 0x197   :  { %v512_v25 = vpop.f32.mrf.mxu3 }
 0x198   :  { %v513_v34 = vadd.f32 %v512_v25, %v411_v23  ;;  %v541_v25 = vmax.f32 %v493_v54, %v525_v12 }
 0x199   :  { %v495_v33 = vpop.f32.mrf.mxu1 }
 0x19a   :  { %v533_v41 = vmul.f32 0.1, %v513_v34  ;;  %v496_v4 = vadd.f32 %v495_v33, %v376_v43 }
 0x19c   :  { %v549_v55 = vmax.f32 %v513_v34, %v533_v41  ;;  %v526_v3 = vmul.f32 0.1, %v496_v4  ;;  %v554_v34 = vpack.c.bf16 %v539_v30, %v538_v15 }
 0x19e   :  { %v559_v62 = vpack.c.bf16 %v549_v55, %v548_v51  ;;  %v542_v20 = vmax.f32 %v496_v4, %v526_v3 }
 0x19f   :  { %v515_v29 = vpop.f32.mrf.mxu3 }
 0x1a0   :  { %v516_v31 = vadd.f32 %v515_v29, %v416_v19  ;;  %v524_v19 = vmul.f32 0.1, %v491_v8 }
 0x1a1   :  { %v497_v59 = vpop.f32.mrf.mxu1 }
 0x1a2   :  { %v534_v37 = vmul.f32 0.1, %v516_v31  ;;  %v498_v50 = vadd.f32 %v497_v59, %v381_v39  ;;  %v540_v29 = vmax.f32 %v491_v8, %v524_v19 }
 0x1a4   :  { %v550_v46 = vmax.f32 %v516_v31, %v534_v37  ;;  %v527_v57 = vmul.f32 0.1, %v498_v50  ;;  %v555_v31 = vpack.c.bf16 %v541_v25, %v540_v29 }
 0x1a6   :  { %v543_v14 = vmax.f32 %v498_v50, %v527_v57 }
 0x1a7   :  { %v517_v35 = vpop.f32.mrf.mxu3 }
 0x1a8   :  { %v518_v38 = vadd.f32 %v517_v35, %v421_v21  ;;  %v351_v21 = vpop.permute.xlu1 %350  ;;  %v556_v26 = vpack.c.bf16 %v543_v14, %v542_v20  ;;  %v536_v35 = vmax.f32 %v481_v22, %v520_v32 }
 0x1a9   :  { %v483_v23 = vadd.f32 %v952_v13, %v351_v21 }
 0x1aa   :  { %v535_v42 = vmul.f32 0.1, %v518_v38 }
 0x1ab   :  { %v521_v17 = vmul.f32 0.1, %v483_v23 }
 0x1ac   :  { %v551_v49 = vmax.f32 %v518_v38, %v535_v42 }
 0x1ad   :  { %v537_v33 = vmax.f32 %v483_v23, %v521_v17 }
 0x1ae   :  { %v560_v56 = vpack.c.bf16 %v551_v49, %v550_v46 }
 0x1af   :  { %v553_v13 = vpack.c.bf16 %v537_v33, %v536_v35 }
 0x1b0   :  { %561 = vmatpush.bf16.msrb.mxu2 %v560_v56 }
 0x1b4   :  { %562 = vmatpush.bf16.msrb.mxu2 %v559_v62 }
 0x1b8   :  { %563 = vmatpush.bf16.msrb.mxu2 %v558_v6 }
 0x1bc   :  { %564 = vmatpush.bf16.msrb.mxu2 %v557_v16 }
 0x1c0   :  { %565 = vmatpush.bf16.msrb.mxu2 %v556_v26 }
 0x1c4   :  { %566 = vmatpush.bf16.msrb.mxu2 %v555_v31 }
 0x1c8   :  { %567 = vmatpush.bf16.msrb.mxu2 %v554_v34 }
 0x1cc   :  { %568 = vmatpush.bf16.msrb.mxu2 %v553_v13 }
 0x1cf   :  { %569 = vmatmul.bf16.vlgmr.msrb.gmra.mxu2 %v552_v36 }
 0x252   :  { %v570_v37 = vpop.f32.mrf.mxu2 }
 0x253   :  { %v576_v38 = vadd.f32 %v575_v11, %v570_v37 }
 0x255   :  { %578 = vst.msk [vmem:[#allocation3] sm:$0x1] %vm577_vm1, %v576_v38 }
 0x256   :  { %589 = dma.vmem_to_hbm [thread:$0]  %s585_s2, 16, %s587_s30, [#allocation4]  }
 0x25a   :  { %v572_v39 = vpop.f32.mrf.mxu2 }
 0x25b   :  { %732 = dma.done.wait [#allocation4], 16  }
 0x25c   :  { %733 = vsyncadd [#allocation4], 4294967280 }
 0x25d   :  { %594 = vsyncpa [#allocation4], 1 }

</bundles_post_ra>
